<compile_context>
chip_gen: v6e
topology: v6e:2x2x1
jax: 0.10.0
libtpu: 0.0.40
codegen_flags: <defaults>
</compile_context>

<pallas_src>
import jax
import jax.numpy as jnp
from jax.experimental import pallas as pl
from jax.experimental.pallas import tpu as pltpu


_TILE_BYTES = 4 * 1024 * 1024        # ~4 MiB per block (in + out double-buffered = 16 MiB)
_VMEM_LIMIT_BYTES = 32 * 1024 * 1024  # safe scoped-VMEM ceiling on v5e/v6e/v7x
_MIN_PALLAS_ELEMS = 1024              # below this, let XLA fuse a plain multiply


def _round_up(x, m):
    return (x + m - 1) // m * m


# ------------------------------ kernel ---------------------------------------

def _scale_kernel(w_ref, g_ref, o_ref):
    # grad_input = weight * grad_output, computed in the gradient dtype.
    w = w_ref[0, 0].astype(o_ref.dtype)
    o_ref[...] = g_ref[...] * w


# --------------------------- pallas wrapper -----------------------------------

def _pick_lanes(n):
    """Largest lane width in {512, 256, 128} that divides n (None if none)."""
    for lanes in (512, 256, 128):
        if n % lanes == 0:
            return lanes
    return None


def _scale_with_pallas(g, weight):
    """Computes weight * g; Pallas kernel for aligned sizes, fused jnp otherwise."""
    shape, dtype = g.shape, g.dtype
    n = g.size

    lanes = _pick_lanes(n)
    if lanes is None or n < _MIN_PALLAS_ELEMS:
        # Unaligned or tiny gradient: a constant elementwise scale is trivially
        # fusable by XLA — cheaper than a dedicated kernel + HBM round trip.
        return (g * jnp.asarray(weight, dtype=dtype)).astype(dtype)

    rows = n // lanes
    g2 = g.reshape(rows, lanes)  # contiguous, same element count -> free bitcast

    itemsize = jnp.dtype(dtype).itemsize
    row_tile = max(8, _TILE_BYTES // (lanes * itemsize))   # e.g. 2048 rows for f32/512 lanes
    if rows <= 8:
        tr = rows                                   # full-dim block (allowed even if <8)
    elif rows <= row_tile:
        tr = _round_up(pl.cdiv(rows, 2), 8)         # >=2 grid steps so both v7x TCs stream
    else:
        tr = row_tile
    grid = (pl.cdiv(rows, tr),)

    # Weight as an SMEM scalar: one Mosaic compile shared across weight values.
    w_arr = jnp.full((1, 1), weight, dtype=jnp.float32)

    cost = pl.CostEstimate(
        flops=n, transcendentals=0, bytes_accessed=2 * n * itemsize)

    out2 = pl.pallas_call(
        _scale_kernel,
        out_shape=jax.ShapeDtypeStruct((rows, lanes), dtype),
        grid_spec=pltpu.PrefetchScalarGridSpec(
            num_scalar_prefetch=0,
            grid=grid,
            in_specs=[
                pl.BlockSpec(memory_space=pltpu.MemorySpace.SMEM),   # weight scalar
                pl.BlockSpec((tr, lanes), lambda i: (i, 0)),         # gradient tile
            ],
            out_specs=pl.BlockSpec((tr, lanes), lambda i: (i, 0)),
        ),
        compiler_params=pltpu.CompilerParams(
            dimension_semantics=("parallel",),
            vmem_limit_bytes=_VMEM_LIMIT_BYTES),
        cost_estimate=cost,
    )(w_arr, g2)

    return out2.reshape(shape)


# ------------------------- GradientScalarLayer -------------------------------

def make_gradient_scalar(weight=4):
    """Returns a function equivalent to GradientScalarLayer(weight).forward."""

    @jax.custom_vjp
    def gradient_scalar(x):
        # Forward is an exact identity (view_as): no kernel, no HBM traffic.
        return x

    def _fwd(x):
        return x, None

    def _bwd(_, g):
        return (_scale_with_pallas(g, weight),)

    gradient_scalar.defvjp(_fwd, _bwd)
    return gradient_scalar


class GradientScalarLayer:
    """JAX/Pallas port of the PyTorch GradientScalarLayer module."""

    def __init__(self, weight=4):
        self.weight = weight
        self._fn = make_gradient_scalar(weight)

    def __call__(self, x):
        return self._fn(x)

    def __repr__(self):
        return f"{self.__class__.__name__}(weight={self.weight})"


# --------------------------------- main --------------------------------------

if __name__ == "__main__":
    key = jax.random.PRNGKey(0)
    layer = GradientScalarLayer(weight=4)

    # 1) Small NCHW input (like the conv feature maps this layer sits on).
    x = jax.random.normal(key, (2, 4, 16, 16), dtype=jnp.float32)

    # Forward: exact identity.
    y = jax.block_until_ready(layer(x))
    assert y.shape == x.shape and y.dtype == x.dtype
    assert bool(jnp.all(y == x))

    # Backward: grad of sum(layer(x)) == weight * ones.  2048 elems = 4 rows
    # of 512 lanes -> exercises the Pallas scale kernel (single-block grid).
    g = jax.block_until_ready(jax.grad(lambda a: jnp.sum(layer(a)))(x))
    assert g.shape == x.shape and g.dtype == x.dtype
    assert bool(jnp.all(g == jnp.full_like(x, 4.0)))

    # 2) Medium gradient -> multi-block grid (rows split across >=2 blocks,
    #    both TensorCores on v7x).
    x_med = jax.random.normal(key, (8, 64, 32, 32), dtype=jnp.float32)
    g_med = jax.block_until_ready(jax.grad(lambda a: jnp.sum(layer(a)))(x_med))
    assert bool(jnp.all(g_med == jnp.full_like(x_med, 4.0)))

    # 3) bf16 gradient stays bf16 through the kernel (weight=4 is exact in bf16).
    x_bf = x.astype(jnp.bfloat16)
    g_bf = jax.block_until_ready(jax.grad(lambda a: jnp.sum(layer(a)))(x_bf))
    assert g_bf.dtype == jnp.bfloat16
    assert bool(jnp.all(g_bf == jnp.full_like(x_bf, 4.0)))

    # 4) Unaligned element count -> fused jnp fallback (no pad/slice round trips).
    x_odd = jax.random.normal(key, (3, 5, 7, 11), dtype=jnp.float32)
    g_odd = jax.block_until_ready(jax.grad(lambda a: jnp.sum(layer(a)))(x_odd))
    assert bool(jnp.all(g_odd == jnp.full_like(x_odd, 4.0)))

    print("KERNEL_OK")
</pallas_src>

<mosaic_0001>
module attributes {stable_mosaic.version = 11 : i64} {
  func.func @_scale_kernel(%arg0: i32, %arg1: memref<1x1xf32, #tpu.memory_space<smem>>, %arg2: memref<4x512xf32, #tpu.memory_space<vmem>>, %arg3: memref<4x512xf32, #tpu.memory_space<vmem>>) attributes {dimension_semantics = [#tpu.dimension_semantics<parallel>], iteration_bounds = array<i64: 1>, scalar_prefetch = 0 : i64, scratch_operands = 0 : i64, tpu.core_type = #tpu.core_type<tc>, window_params = [{transform_indices = @transform_0, window_bounds = array<i64: 1, 1>}, {transform_indices = @transform_1, window_bounds = array<i64: 4, 512>}, {transform_indices = @transform_2, window_bounds = array<i64: 4, 512>}]} {
    %c0 = arith.constant 0 : index
    %c0_0 = arith.constant 0 : index
    %0 = memref.load %arg1[%c0, %c0_0] : memref<1x1xf32, #tpu.memory_space<smem>>
    %c0_1 = arith.constant 0 : index
    %c0_2 = arith.constant 0 : index
    %1 = vector.load %arg2[%c0_1, %c0_2] : memref<4x512xf32, #tpu.memory_space<vmem>>, vector<4x512xf32>
    %2 = vector.broadcast %0 : f32 to vector<4x512xf32>
    %3 = arith.mulf %1, %2 : vector<4x512xf32>
    %c0_3 = arith.constant 0 : index
    %c0_4 = arith.constant 0 : index
    %4 = vector.load %arg3[%c0_3, %c0_4] : memref<4x512xf32, #tpu.memory_space<vmem>>, vector<4x512xf32>
    tpu.vector_store %arg3[%c0_3, %c0_4], %3 {strides = array<i32>} : memref<4x512xf32, #tpu.memory_space<vmem>>, vector<4x512xf32>,
    return
  }
  func.func @transform_0(%arg0: i32) -> (i32, i32) {
    %c0_i32 = arith.constant 0 : i32
    %c0_i32_0 = arith.constant 0 : i32
    %c0_i32_1 = arith.constant 0 : i32
    return %c0_i32, %c0_i32_0 : i32, i32
  }
  func.func @transform_1(%arg0: i32) -> (i32, i32) {
    %c0_i32 = arith.constant 0 : i32
    %c0_i32_0 = arith.constant 0 : i32
    return %arg0, %c0_i32 : i32, i32
  }
  func.func @transform_2(%arg0: i32) -> (i32, i32) {
    %c0_i32 = arith.constant 0 : i32
    %c0_i32_0 = arith.constant 0 : i32
    return %arg0, %c0_i32 : i32, i32
  }
}

</mosaic_0001>

<bundles_post_ra>
// kernel: tpu_custom_call.1
= control target key start
LH: loop header
LB: loop body
LE: loop exit
PB: predicated region body
PF: predicated region fallthrough
CT: control target
= control target key end

     0   :  { %8 = vsyncpa [#allocation4], 0  ;;  %s120_s0 = inlined_call_operand.<no memory space> [shape: f32[1,1], index: 0, kind: input, shape index: {}]   ;;  %s121_s1 = inlined_call_operand.hbm [shape: f32[4,512], index: 1, kind: input, shape index: {}]   ;;  %s122_s2 = inlined_call_operand.hbm [shape: f32[4,512], index: 2, kind: output, shape index: {}]  }
   0x1   :  { %9 = vsyncpa [#allocation5], 0  ;;  %s94_s9 = smov [#allocation3]  }
   0x2   :  { %s18_s10 = sshll.u32 %s94_s9, 4  ;;  %s19_s10 = int_to_ptr.vmem [resolvable:$true] %s18_s10 }
   0x3   :  { %s58_s11 = scalar_lea.vmem %s19_s10, 256  ;;  %p63_p1 = scmp.lt.s32.totalorder %s19_s10, %s19_s10 }
   0x4   :  { %p59_p0 = scmp.ne.s32.totalorder %s19_s10, %s58_s11  ;;  %p64_p2 = scmp.lt.s32.totalorder %s58_s11, %s58_s11 }
   0x6   :  { %p65_p3 = por %p64_p2, %p63_p1 }
   0x8   :  { %p66_p4 = pnand %p65_p3, %p59_p0 }
   0xa   :  { %69 = shalt.err (!%p66_p4)
}
   0xb   :  { %21 = dma.hbm_to_vmem [thread:$0]  %s121_s1, 256, %s19_s10, [#allocation4]  }
   0xc   :  { %90 = dma.done.wait [#allocation4], 256  }
   0xd   :  { %91 = vsyncadd [#allocation4], 4294967040  ;;  %v28_v0 = vstv %s120_s0  ;;  %s95_s16 = smov [#allocation6]   ;;  %v26_v1 = vld [vmem:[#allocation3] sm:$0xff]  ;;  %v27_v2 = vld [vmem:[#allocation3 + $0x8] sm:$0xff] }
   0xe   :  { %s39_s17 = sshll.u32 %s95_s16, 4  ;;  %v29_v3 = vmul.f32 %v28_v0, %v26_v1  ;;  %v30_v4 = vmul.f32 %v28_v0, %v27_v2  ;;  %s40_s17 = int_to_ptr.vmem [resolvable:$true] %s39_s17 }
   0xf   :  { %s70_s18 = scalar_lea.vmem %s40_s17, 256  ;;  %p75_p6 = scmp.lt.s32.totalorder %s40_s17, %s40_s17 }
  0x10   :  { %31 = vst [vmem:[#allocation6] sm:$0xff] %v29_v3  ;;  %32 = vst [vmem:[#allocation6 + $0x8] sm:$0xff] %v30_v4  ;;  %p71_p5 = scmp.ne.s32.totalorder %s40_s17, %s70_s18  ;;  %p76_p7 = scmp.lt.s32.totalorder %s70_s18, %s70_s18 }
  0x12   :  { %p77_p8 = por %p76_p7, %p75_p6 }
  0x14   :  { %p78_p9 = pnand %p77_p8, %p71_p5 }
  0x16   :  { %81 = shalt.err (!%p78_p9)
}
  0x17   :  { %42 = dma.vmem_to_hbm [thread:$0]  %s40_s17, 256, %s122_s2, [#allocation5]  }
  0x18   :  { %92 = dma.done.wait [#allocation5], 256  }
  0x19   :  { %93 = vsyncadd [#allocation5], 4294967040 }
  0x1a   :  { %46 = vsyncpa [#allocation4], 1 }
  0x1b   :  { %47 = vsyncpa [#allocation5], 1 }

</bundles_post_ra>
